<compile_context>
chip_gen: v6e
topology: v6e:2x2x1
jax: 0.10.0
libtpu: 0.0.40
codegen_flags: <defaults>
</compile_context>

<pallas_src>
import functools
import math

import jax
import jax.numpy as jnp
from jax.experimental import pallas as pl
from jax.experimental.pallas import tpu as pltpu

_LANES = 128
_ACC_ROWS = 32                       # 4 independent (8,128) accumulator vregs per block
_ROW_ALIGN = 32                      # multiple of 8 (f32), 16 (bf16/f16) and _ACC_ROWS
_MAX_TILE_ROWS_REDUCE = 8192         # 8192*128*4 B = 4 MiB per f32 input tile
_MAX_TILE_ROWS_NONE = 4096           # 'none' also streams a full-size output
_VMEM_LIMIT_BYTES = 48 * 1024 * 1024  # < 64 MiB physical VMEM on v7x, fine on v5e/v6e
_MIN_PALLAS_ELEMS = 65536            # below this a fused jnp expression wins


def _round_up(x, m):
    return ((x + m - 1) // m) * m


# ----------------------------------------------------------------------------
# Kernels
# ----------------------------------------------------------------------------
def _rmse_partial_sum_kernel(eps, valid_rows, tile_rows, needs_mask,
                             y_pred_ref, y_true_ref, partial_ref):
    """Per-block partial sums of sqrt((pred-true)^2 + eps) -> (_ACC_ROWS, 128).

    The block is folded with _ACC_ROWS independent per-sublane accumulators
    (pure VPU vreg adds, no cross-lane XLU reduce).  Only the last grid block
    pays for row masking, and only when the row count is not tile-aligned.
    """
    eps_f = jnp.float32(eps)

    def block_loss():
        diff = (y_pred_ref[...].astype(jnp.float32)
                - y_true_ref[...].astype(jnp.float32))
        return jnp.sqrt(diff * diff + eps_f)

    def fold(loss):
        # (tile_rows,128) -> (tile_rows/32, 32, 128); sum over the leading dim
        # gives 4 independent (8,128) vreg accumulation chains.
        partial_ref[...] = jnp.sum(loss.reshape(-1, _ACC_ROWS, _LANES), axis=0)

    if not needs_mask:
        fold(block_loss())
    else:
        i = pl.program_id(0)
        last = pl.num_programs(0) - 1

        @pl.when(i < last)
        def _():
            fold(block_loss())

        @pl.when(i == last)
        def _():
            rows_left = valid_rows - i * tile_rows
            row_id = jax.lax.broadcasted_iota(jnp.int32, (tile_rows, _LANES), 0)
            fold(jnp.where(row_id < rows_left, block_loss(), 0.0))


def _rmse_elementwise_kernel(eps, y_pred_ref, y_true_ref, out_ref):
    """Elementwise sqrt((pred-true)^2 + eps), written back in the output dtype."""
    diff = (y_pred_ref[...].astype(jnp.float32)
            - y_true_ref[...].astype(jnp.float32))
    out_ref[...] = jnp.sqrt(diff * diff + jnp.float32(eps)).astype(out_ref.dtype)


# ----------------------------------------------------------------------------
# Wrapper (equivalent of RMSELoss.forward)
# ----------------------------------------------------------------------------
def rmse_loss(y_pred, y_true, reduction="mean", eps=1e-9,
              max_tile_rows=None, min_pallas_elems=_MIN_PALLAS_ELEMS):
    assert y_pred.shape == y_true.shape
    if reduction not in ("none", "sum", "mean"):
        raise ValueError(f"unknown reduction: {reduction}")

    orig_shape = y_pred.shape
    orig_dtype = y_pred.dtype
    n_elems = math.prod(orig_shape)

    def _loss_f32(p, t):
        d = p.astype(jnp.float32) - t.astype(jnp.float32)
        return jnp.sqrt(d * d + jnp.float32(eps))

    # -- small-input fast path: kernel launch + partial-sum plumbing would
    #    dominate (this is the path the real kaggle_ell (batch, 6) shape takes).
    if n_elems < max(min_pallas_elems, _LANES):
        loss = _loss_f32(y_pred, y_true)
        if reduction == "none":
            return loss.astype(orig_dtype)
        total = jnp.sum(loss)
        return total if reduction == "sum" else total / jnp.float32(n_elems)

    # -- lane-dense (rows, 128) bulk view: metadata-only reshape, native dtype,
    #    no wrapper pad.  The < 128-element ragged tail is finished with jnp.
    flat_p = y_pred.reshape(-1)
    flat_t = y_true.reshape(-1)
    n_bulk = (n_elems // _LANES) * _LANES
    bulk_rows = n_bulk // _LANES
    has_tail = n_bulk != n_elems

    if has_tail:
        tail_p, tail_t = flat_p[n_bulk:], flat_t[n_bulk:]
        bulk_p = flat_p[:n_bulk].reshape(bulk_rows, _LANES)
        bulk_t = flat_t[:n_bulk].reshape(bulk_rows, _LANES)
    else:
        bulk_p = flat_p.reshape(bulk_rows, _LANES)
        bulk_t = flat_t.reshape(bulk_rows, _LANES)

    if max_tile_rows is None:
        max_tile_rows = (_MAX_TILE_ROWS_NONE if reduction == "none"
                         else _MAX_TILE_ROWS_REDUCE)
    max_tile_rows = max(_ROW_ALIGN, _round_up(max_tile_rows, _ROW_ALIGN))

    # Balanced tiles: pick the grid first, then the (aligned) tile size, then
    # recompute the grid so the last block is never entirely out of bounds.
    grid0 = pl.cdiv(bulk_rows, max_tile_rows)
    tile_rows = min(max_tile_rows,
                    _round_up(pl.cdiv(bulk_rows, grid0), _ROW_ALIGN))
    grid = pl.cdiv(bulk_rows, tile_rows)
    needs_mask = (bulk_rows % tile_rows) != 0

    in_spec = pl.BlockSpec((tile_rows, _LANES), lambda i: (i, 0))
    cparams = pltpu.CompilerParams(
        dimension_semantics=("parallel",),
        vmem_limit_bytes=_VMEM_LIMIT_BYTES,
    )

    if reduction == "none":
        bulk_out = pl.pallas_call(
            functools.partial(_rmse_elementwise_kernel, eps),
            out_shape=jax.ShapeDtypeStruct((bulk_rows, _LANES), orig_dtype),
            grid=(grid,),
            in_specs=[in_spec, in_spec],
            out_specs=pl.BlockSpec((tile_rows, _LANES), lambda i: (i, 0)),
            compiler_params=cparams,
        )(bulk_p, bulk_t)
        flat_out = bulk_out.reshape(-1)
        if has_tail:
            flat_out = jnp.concatenate(
                [flat_out, _loss_f32(tail_p, tail_t).astype(orig_dtype)])
        return flat_out.reshape(orig_shape)

    # 'sum' / 'mean': fully parallel per-block (32,128) partials, finished by a
    # tiny XLA sum in the wrapper (partials are ~1e-4 of the input bytes).
    partials = pl.pallas_call(
        functools.partial(_rmse_partial_sum_kernel, eps, bulk_rows, tile_rows,
                          needs_mask),
        out_shape=jax.ShapeDtypeStruct((grid * _ACC_ROWS, _LANES), jnp.float32),
        grid=(grid,),
        in_specs=[in_spec, in_spec],
        out_specs=pl.BlockSpec((_ACC_ROWS, _LANES), lambda i: (i, 0)),
        compiler_params=cparams,
    )(bulk_p, bulk_t)

    total = jnp.sum(partials)
    if has_tail:
        total = total + jnp.sum(_loss_f32(tail_p, tail_t))

    if reduction == "sum":
        return total
    return total / jnp.float32(n_elems)


# ----------------------------------------------------------------------------
# Demo / self-check
# ----------------------------------------------------------------------------
if __name__ == "__main__":
    key = jax.random.PRNGKey(0)
    k1, k2, k3, k4, k5, k6, k7, k8 = jax.random.split(key, 8)
    eps = 1e-9

    def ref_loss(p, t):
        d = p.astype(jnp.float32) - t.astype(jnp.float32)
        return jnp.sqrt(d * d + jnp.float32(eps))

    def check(p, t, bf16=False, **kw):
        ref = ref_loss(p, t)
        out_none = jax.block_until_ready(rmse_loss(p, t, "none", eps, **kw))
        out_sum = jax.block_until_ready(rmse_loss(p, t, "sum", eps, **kw))
        out_mean = jax.block_until_ready(rmse_loss(p, t, "mean", eps, **kw))
        assert out_none.shape == p.shape and out_none.dtype == p.dtype
        tol = 1e-2 if bf16 else 1e-5
        assert jnp.allclose(out_none.astype(jnp.float32), ref, rtol=tol, atol=tol)
        assert jnp.allclose(out_sum, ref.sum(), rtol=1e-4, atol=1e-3)
        assert jnp.allclose(out_mean, ref.mean(), rtol=1e-4, atol=1e-5)

    # 1) Pallas path: lane-aligned, single block, f32, no masking.
    p1 = jax.random.normal(k1, (256, 128), jnp.float32)
    t1 = jax.random.normal(k2, (256, 128), jnp.float32)
    check(p1, t1, min_pallas_elems=0)

    # 2) Pallas path: ragged total (jnp tail) + partial row block (in-kernel mask).
    p2 = jax.random.normal(k3, (171, 77), jnp.float32)
    t2 = jax.random.normal(k4, (171, 77), jnp.float32)
    check(p2, t2, min_pallas_elems=0)

    # 3) Pallas path: multi-block grid (5 steps) + last-block mask (forced small tile).
    p3 = jax.random.normal(k5, (300, 128), jnp.float32)
    t3 = jax.random.normal(k6, (300, 128), jnp.float32)
    check(p3, t3, min_pallas_elems=0, max_tile_rows=64)

    # 4) Pallas path: native bf16 inputs (no wrapper up-cast), bf16 'none' output.
    p4 = jax.random.normal(k7, (256, 192), jnp.float32).astype(jnp.bfloat16)
    t4 = jax.random.normal(k8, (256, 192), jnp.float32).astype(jnp.bfloat16)
    check(p4, t4, bf16=True, min_pallas_elems=0)

    # 5) Real kaggle_ell shape (batch=8, num_targets=6): fused-jnp fast path.
    p5 = jax.random.normal(k1, (8, 6), jnp.float32)
    t5 = jax.random.normal(k2, (8, 6), jnp.float32)
    check(p5, t5)

    print("KERNEL_OK")
</pallas_src>

<mosaic_0001>
module attributes {stable_mosaic.version = 11 : i64} {
  func.func @_rmse_elementwise_kernel(%arg0: i32, %arg1: memref<256x128xf32, #tpu.memory_space<vmem>>, %arg2: memref<256x128xf32, #tpu.memory_space<vmem>>, %arg3: memref<256x128xf32, #tpu.memory_space<vmem>>) attributes {dimension_semantics = [#tpu.dimension_semantics<parallel>], iteration_bounds = array<i64: 1>, scalar_prefetch = 0 : i64, scratch_operands = 0 : i64, tpu.core_type = #tpu.core_type<tc>, window_params = [{transform_indices = @transform_0, window_bounds = array<i64: 256, 128>}, {transform_indices = @transform_1, window_bounds = array<i64: 256, 128>}, {transform_indices = @transform_2, window_bounds = array<i64: 256, 128>}]} {
    %c0 = arith.constant 0 : index
    %c0_0 = arith.constant 0 : index
    %0 = vector.load %arg1[%c0, %c0_0] : memref<256x128xf32, #tpu.memory_space<vmem>>, vector<256x128xf32>
    %c0_1 = arith.constant 0 : index
    %c0_2 = arith.constant 0 : index
    %1 = vector.load %arg2[%c0_1, %c0_2] : memref<256x128xf32, #tpu.memory_space<vmem>>, vector<256x128xf32>
    %2 = arith.subf %0, %1 : vector<256x128xf32>
    %3 = arith.mulf %2, %2 : vector<256x128xf32>
    %cst = arith.constant 9.99999971E-10 : f32
    %4 = vector.broadcast %cst : f32 to vector<256x128xf32>
    %5 = arith.addf %3, %4 : vector<256x128xf32>
    %6 = math.sqrt %5 : vector<256x128xf32>
    %c0_3 = arith.constant 0 : index
    %c0_4 = arith.constant 0 : index
    %7 = vector.load %arg3[%c0_3, %c0_4] : memref<256x128xf32, #tpu.memory_space<vmem>>, vector<256x128xf32>
    tpu.vector_store %arg3[%c0_3, %c0_4], %6 {strides = array<i32>} : memref<256x128xf32, #tpu.memory_space<vmem>>, vector<256x128xf32>,
    return
  }
  func.func @transform_0(%arg0: i32) -> (i32, i32) {
    %c0_i32 = arith.constant 0 : i32
    %c0_i32_0 = arith.constant 0 : i32
    return %arg0, %c0_i32 : i32, i32
  }
  func.func @transform_1(%arg0: i32) -> (i32, i32) {
    %c0_i32 = arith.constant 0 : i32
    %c0_i32_0 = arith.constant 0 : i32
    return %arg0, %c0_i32 : i32, i32
  }
  func.func @transform_2(%arg0: i32) -> (i32, i32) {
    %c0_i32 = arith.constant 0 : i32
    %c0_i32_0 = arith.constant 0 : i32
    return %arg0, %c0_i32 : i32, i32
  }
}

</mosaic_0001>

<bundles_post_ra>
// kernel: tpu_custom_call.1
= control target key start
LH: loop header
LB: loop body
LE: loop exit
PB: predicated region body
PF: predicated region fallthrough
CT: control target
= control target key end

     0   :  { %7 = vsyncpa [#allocation3], 0  ;;  %s987_s0 = inlined_call_operand.hbm [shape: f32[256,128], index: 0, kind: input, shape index: {}]   ;;  %s988_s1 = inlined_call_operand.hbm [shape: f32[256,128], index: 1, kind: input, shape index: {}]   ;;  %s989_s2 = inlined_call_operand.hbm [shape: f32[256,128], index: 2, kind: output, shape index: {}]  }
   0x1   :  { %8 = vsyncpa [#allocation6], 0 }
   0x2   :  { %9 = vsyncpa [#allocation4], 0  ;;  %s609_s9 = smov [#allocation2]  }
   0x3   :  { %s15_s10 = sshll.u32 %s609_s9, 4  ;;  %s16_s10 = int_to_ptr.vmem [resolvable:$true] %s15_s10 }
   0x4   :  { %s551_s11 = scalar_lea.vmem %s16_s10, 4096  ;;  %p556_p1 = scmp.lt.s32.totalorder %s16_s10, %s16_s10 }
   0x5   :  { %p552_p0 = scmp.ne.s32.totalorder %s16_s10, %s551_s11  ;;  %p557_p2 = scmp.lt.s32.totalorder %s551_s11, %s551_s11 }
   0x7   :  { %p558_p3 = por %p557_p2, %p556_p1 }
   0x9   :  { %p559_p4 = pnand %p558_p3, %p552_p0 }
   0xb   :  { %562 = shalt.err (!%p559_p4)
}
   0xc   :  { %s610_s12 = smov 128   ;;  %s611_s13 = smov 8  }
   0xd   :  { %21 = dma.hbm_to_vmem [thread:$0]  %s987_s0, 4096, %s16_s10, [#allocation3], %s610_s12, %s610_s12, %s611_s13  }
   0xe   :  { %s612_s16 = smov [#allocation5]  }
   0xf   :  { %s27_s17 = sshll.u32 %s612_s16, 4  ;;  %s28_s17 = int_to_ptr.vmem [resolvable:$true] %s27_s17 }
  0x10   :  { %s571_s18 = scalar_lea.vmem %s28_s17, 4096  ;;  %p576_p6 = scmp.lt.s32.totalorder %s28_s17, %s28_s17 }
  0x11   :  { %p572_p5 = scmp.ne.s32.totalorder %s28_s17, %s571_s18  ;;  %p577_p7 = scmp.lt.s32.totalorder %s571_s18, %s571_s18 }
  0x13   :  { %p578_p8 = por %p577_p7, %p576_p6 }
  0x15   :  { %p579_p9 = pnand %p578_p8, %p572_p5 }
  0x17   :  { %582 = shalt.err (!%p579_p9)
}
  0x18   :  { %33 = dma.hbm_to_vmem [thread:$0]  %s988_s1, 4096, %s28_s17, [#allocation6], %s610_s12, %s610_s12, %s611_s13  }
  0x19   :  { %603 = dma.done.wait [#allocation3], 4096  }
  0x1a   :  { %604 = vsyncadd [#allocation3], 4294963200 }
  0x1b   :  { %605 = dma.done.wait [#allocation6], 4096  }
  0x1c   :  { %606 = vsyncadd [#allocation6], 4294963200  ;;  %v40_v0 = vld [vmem:[#allocation2] sm:$0xff]  ;;  %v41_v2 = vld [vmem:[#allocation2 + $0x8] sm:$0xff]  ;;  %s613_s0 = smov [#allocation7]  }
  0x1d   :  { %v72_v1 = vld [vmem:[#allocation5] sm:$0xff]  ;;  %v73_v4 = vld [vmem:[#allocation5 + $0x8] sm:$0xff]  ;;  %v42_v5 = vld [vmem:[#allocation2 + $0x10] sm:$0xff]  ;;  %s461_s1 = sshll.u32 %s613_s0, 4  ;;  %s462_s1 = int_to_ptr.vmem [resolvable:$true] %s461_s1 }
  0x1e   :  { %v104_v3 = vsub.f32 %v40_v0, %v72_v1  ;;  %v74_v6 = vld [vmem:[#allocation5 + $0x10] sm:$0xff]  ;;  %v105_v7 = vsub.f32 %v41_v2, %v73_v4  ;;  %v43_v9 = vld [vmem:[#allocation2 + $0x18] sm:$0xff]  ;;  %v44_v11 = vld [vmem:[#allocation2 + $0x20] sm:$0xff]  ;;  %s583_s21 = scalar_lea.vmem %s462_s1, 4096  ;;  %p588_p11 = scmp.lt.s32.totalorder %s462_s1, %s462_s1 }
  0x1f   :  { %v106_v8 = vsub.f32 %v42_v5, %v74_v6  ;;  %v75_v10 = vld [vmem:[#allocation5 + $0x18] sm:$0xff]  ;;  %v76_v14 = vld [vmem:[#allocation5 + $0x20] sm:$0xff]  ;;  %v45_v15 = vld [vmem:[#allocation2 + $0x28] sm:$0xff]  ;;  %p584_p10 = scmp.ne.s32.totalorder %s462_s1, %s583_s21  ;;  %p589_p12 = scmp.lt.s32.totalorder %s583_s21, %s583_s21 }
  0x20   :  { %v136_v12 = vmul.f32 %v104_v3, %v104_v3  ;;  %v107_v13 = vsub.f32 %v43_v9, %v75_v10  ;;  %v77_v16 = vld [vmem:[#allocation5 + $0x28] sm:$0xff]  ;;  %v137_v17 = vmul.f32 %v105_v7, %v105_v7  ;;  %v108_v19 = vsub.f32 %v44_v11, %v76_v14  ;;  %v46_v21 = vld [vmem:[#allocation2 + $0x30] sm:$0xff]  ;;  %v47_v30 = vld [vmem:[#allocation2 + $0x38] sm:$0xff] }
  0x21   :  { %v138_v18 = vmul.f32 %v106_v8, %v106_v8  ;;  %v109_v20 = vsub.f32 %v45_v15, %v77_v16  ;;  %v78_v22 = vld [vmem:[#allocation5 + $0x30] sm:$0xff]  ;;  %v79_v31 = vld [vmem:[#allocation5 + $0x38] sm:$0xff]  ;;  %v48_v32 = vld [vmem:[#allocation2 + $0x40] sm:$0xff]  ;;  %p590_p13 = por %p589_p12, %p588_p11 }
  0x22   :  { %v641_v23 = vadd.f32 1e-09, %v136_v12  ;;  %v139_v24 = vmul.f32 %v107_v13, %v107_v13  ;;  %v643_v25 = vadd.f32 1e-09, %v137_v17  ;;  %v140_v27 = vmul.f32 %v108_v19, %v108_v19  ;;  %v80_v33 = vld [vmem:[#allocation5 + $0x40] sm:$0xff]  ;;  %v49_v34 = vld [vmem:[#allocation2 + $0x48] sm:$0xff] }
  0x23   :  { %v645_v26 = vadd.f32 1e-09, %v138_v18  ;;  %v141_v28 = vmul.f32 %v109_v20, %v109_v20  ;;  %v110_v29 = vsub.f32 %v46_v21, %v78_v22  ;;  %v81_v35 = vld [vmem:[#allocation5 + $0x48] sm:$0xff]  ;;  %v50_v36 = vld [vmem:[#allocation2 + $0x50] sm:$0xff]  ;;  %v111_v42 = vsub.f32 %v47_v30, %v79_v31  ;;  %v51_v47 = vld [vmem:[#allocation2 + $0x58] sm:$0xff]  ;;  %p591_p0 = pnand %p590_p13, %p584_p10 }
  0x24   :  { %479 = vrsqrt.f32 %v641_v23  ;;  %v82_v37 = vld [vmem:[#allocation5 + $0x50] sm:$0xff]  ;;  %v650_v38 = vadd.f32 1e-09, %v139_v24  ;;  %v652_v39 = vadd.f32 1e-09, %v140_v27  ;;  %v112_v43 = vsub.f32 %v48_v32, %v80_v33  ;;  %v83_v48 = vld [vmem:[#allocation5 + $0x58] sm:$0xff] }
  0x25   :  { %481 = vrsqrt.f32 %v643_v25  ;;  %v654_v40 = vadd.f32 1e-09, %v141_v28  ;;  %v142_v41 = vmul.f32 %v110_v29, %v110_v29  ;;  %v113_v44 = vsub.f32 %v49_v34, %v81_v35  ;;  %v52_v53 = vld [vmem:[#allocation2 + $0x60] sm:$0xff]  ;;  %v53_v59 = vld [vmem:[#allocation2 + $0x68] sm:$0xff]  ;;  %v54_v13 = vld [vmem:[#allocation2 + $0x70] sm:$0xff] }
  0x26   :  { %483 = vrsqrt.f32 %v645_v26  ;;  %v114_v45 = vsub.f32 %v50_v36, %v82_v37  ;;  %vm202_vm0 = vcmp.eq.f32.partialorder %v641_v23, inf  ;;  %vm204_vm1 = vcmp.eq.f32.partialorder %v641_v23, 0.0  ;;  %v84_v54 = vld [vmem:[#allocation5 + $0x60] sm:$0xff]  ;;  %v85_v60 = vld [vmem:[#allocation5 + $0x68] sm:$0xff]  ;;  %v86_v14 = vld [vmem:[#allocation5 + $0x70] sm:$0xff] }
  0x27   :  { %485 = vrsqrt.f32 %v650_v38  ;;  %v205_v46 = vand.u32 2147483648, %v641_v23  ;;  %vm209_vm2 = vcmp.eq.f32.partialorder %v643_v25, inf  ;;  %vm211_vm3 = vcmp.eq.f32.partialorder %v643_v25, 0.0  ;;  %v87_v32 = vld [vmem:[#allocation5 + $0x78] sm:$0xff] }
  0x28   :  { %487 = vrsqrt.f32 %v652_v39  ;;  %v664_v49 = vadd.f32 1e-09, %v142_v41  ;;  %v143_v50 = vmul.f32 %v111_v42, %v111_v42  ;;  %v144_v51 = vmul.f32 %v112_v43, %v112_v43 }
  0x29   :  { %489 = vrsqrt.f32 %v654_v40  ;;  %v145_v52 = vmul.f32 %v113_v44, %v113_v44  ;;  %v212_v55 = vand.u32 2147483648, %v643_v25  ;;  %vm216_vm4 = vcmp.eq.f32.partialorder %v645_v26, inf }
  0x2a   :  { %vm218_vm5 = vcmp.eq.f32.partialorder %v645_v26, 0.0  ;;  %v146_v56 = vmul.f32 %v114_v45, %v114_v45  ;;  %v219_v57 = vand.u32 2147483648, %v645_v26  ;;  %vm223_vm6 = vcmp.eq.f32.partialorder %v650_v38, inf }
  0x2b   :  { %491 = vrsqrt.f32 %v664_v49  ;;  %v115_v58 = vsub.f32 %v51_v47, %v83_v48  ;;  %vm225_vm7 = vcmp.eq.f32.partialorder %v650_v38, 0.0  ;;  %v673_v61 = vadd.f32 1e-09, %v143_v50  ;;  %v88_v48 = vld [vmem:[#allocation5 + $0x80] sm:$0xff] }
  0x2c   :  { %v675_v62 = vadd.f32 1e-09, %v144_v51  ;;  %v677_v63 = vadd.f32 1e-09, %v145_v52  ;;  %v116_v0 = vsub.f32 %v52_v53, %v84_v54  ;;  %v226_v1 = vand.u32 2147483648, %v650_v38  ;;  %v57_v52 = vld [vmem:[#allocation2 + $0x88] sm:$0xff] }
  0x2d   :  { %vm230_vm8 = vcmp.eq.f32.partialorder %v652_v39, inf  ;;  %vm232_vm9 = vcmp.eq.f32.partialorder %v652_v39, 0.0  ;;  %v233_v2 = vand.u32 2147483648, %v652_v39  ;;  %vm237_vm10 = vcmp.eq.f32.partialorder %v654_v40, inf  ;;  %v89_v53 = vld [vmem:[#allocation5 + $0x88] sm:$0xff] }
  0x2e   :  { %493 = vrsqrt.f32 %v673_v61  ;;  %v685_v4 = vadd.f32 1e-09, %v146_v56  ;;  %v117_v5 = vsub.f32 %v53_v59, %v85_v60  ;;  %vm239_vm11 = vcmp.eq.f32.partialorder %v654_v40, 0.0  ;;  %v58_v59 = vld [vmem:[#allocation2 + $0x90] sm:$0xff] }
  0x2f   :  { %v240_v8 = vand.u32 2147483648, %v654_v40  ;;  %495 = vrsqrt.f32 %v675_v62  ;;  %v147_v11 = vmul.f32 %v115_v58, %v115_v58  ;;  %v148_v12 = vmul.f32 %v116_v0, %v116_v0  ;;  %v90_v60 = vld [vmem:[#allocation5 + $0x90] sm:$0xff] }
  0x30   :  { %497 = vrsqrt.f32 %v677_v63  ;;  %vm244_vm12 = vcmp.eq.f32.partialorder %v664_v49, inf  ;;  %vm246_vm13 = vcmp.eq.f32.partialorder %v664_v49, 0.0  ;;  %v149_v19 = vmul.f32 %v117_v5, %v117_v5 }
  0x31   :  { %v480_v3 = vpop.eup %479  ;;  %499 = vrsqrt.f32 %v685_v4  ;;  %v247_v24 = vand.u32 2147483648, %v664_v49  ;;  %v714_v30 = vadd.f32 1e-09, %v147_v11  ;;  %v716_v31 = vadd.f32 1e-09, %v148_v12 }
  0x32   :  { %v482_v6 = vpop.eup %481  ;;  %v201_v7 = vmul.f32 %v480_v3, %v641_v23  ;;  %vm251_vm14 = vcmp.eq.f32.partialorder %v673_v61, inf  ;;  %vm253_vm15 = vcmp.eq.f32.partialorder %v673_v61, 0.0  ;;  %v254_v35 = vand.u32 2147483648, %v673_v61 }
  0x33   :  { %v484_v9 = vpop.eup %483  ;;  %v208_v10 = vmul.f32 %v482_v6, %v643_v25  ;;  %501 = vrsqrt.f32 %v714_v30  ;;  %v727_v37 = vadd.f32 1e-09, %v149_v19  ;;  %v268_v54 = vand.u32 2147483648, %v677_v63 }
  0x34   :  { %v203_v15 = vsel %vm202_vm0, %v641_v23, %v201_v7  ;;  %v215_v16 = vmul.f32 %v484_v9, %v645_v26  ;;  %v486_v20 = vpop.eup %485  ;;  %v118_v23 = vsub.f32 %v54_v13, %v86_v14  ;;  %vm258_vm0 = vcmp.eq.f32.partialorder %v675_v62, inf }
  0x35   :  { %v206_v17 = vsel %vm204_vm1, %v205_v46, %v203_v15  ;;  %v210_v18 = vsel %vm209_vm2, %v643_v25, %v208_v10  ;;  %v488_v27 = vpop.eup %487  ;;  %v222_v29 = vmul.f32 %v486_v20, %v650_v38  ;;  %v55_v25 = vld [vmem:[#allocation2 + $0x78] sm:$0xff]  ;;  %503 = vrsqrt.f32 %v716_v31 }
  0x36   :  { %424 = vst [vmem:[#allocation7] sm:$0xff] %v206_v17  ;;  %v213_v21 = vsel %vm211_vm3, %v212_v55, %v210_v18  ;;  %v217_v22 = vsel %vm216_vm4, %v645_v26, %v215_v16  ;;  %v490_v33 = vpop.eup %489  ;;  %v229_v34 = vmul.f32 %v488_v27, %v652_v39  ;;  %v150_v43 = vmul.f32 %v118_v23, %v118_v23  ;;  %v59_v16 = vld [vmem:[#allocation2 + $0x98] sm:$0xff]  ;;  %v60_v18 = vld [vmem:[#allocation2 + $0xa0] sm:$0xff] }
  0x37   :  { %425 = vst [vmem:[#allocation7 + $0x8] sm:$0xff] %v213_v21  ;;  %v220_v28 = vsel %vm218_vm5, %v219_v57, %v217_v22  ;;  %v224_v26 = vsel %vm223_vm6, %v650_v38, %v222_v29  ;;  %v236_v36 = vmul.f32 %v490_v33, %v654_v40  ;;  %v119_v44 = vsub.f32 %v55_v25, %v87_v32  ;;  %v56_v38 = vld [vmem:[#allocation2 + $0x80] sm:$0xff]  ;;  %v91_v17 = vld [vmem:[#allocation5 + $0x98] sm:$0xff]  ;;  %v61_v22 = vld [vmem:[#allocation2 + $0xa8] sm:$0xff] }
  0x38   :  { %426 = vst [vmem:[#allocation7 + $0x10] sm:$0xff] %v220_v28  ;;  %v227_v41 = vsel %vm225_vm7, %v226_v1, %v224_v26  ;;  %v231_v42 = vsel %vm230_vm8, %v652_v39, %v229_v34  ;;  %v492_v45 = vpop.eup %491  ;;  %vm260_vm1 = vcmp.eq.f32.partialorder %v675_v62, 0.0  ;;  %v261_v39 = vand.u32 2147483648, %v675_v62  ;;  %v92_v21 = vld [vmem:[#allocation5 + $0xa0] sm:$0xff] }
  0x39   :  { %427 = vst [vmem:[#allocation7 + $0x18] sm:$0xff] %v227_v41  ;;  %v234_v46 = vsel %vm232_vm9, %v233_v2, %v231_v42  ;;  %v238_v47 = vsel %vm237_vm10, %v654_v40, %v236_v36  ;;  %v243_v51 = vmul.f32 %v492_v45, %v664_v49  ;;  %vm265_vm2 = vcmp.eq.f32.partialorder %v677_v63, inf }
  0x3a   :  { %428 = vst [vmem:[#allocation7 + $0x20] sm:$0xff] %v234_v46  ;;  %v241_v50 = vsel %vm239_vm11, %v240_v8, %v238_v47  ;;  %vm267_vm3 = vcmp.eq.f32.partialorder %v677_v63, 0.0  ;;  %505 = vrsqrt.f32 %v727_v37  ;;  %v753_v56 = vadd.f32 1e-09, %v150_v43 }
  0x3b   :  { %429 = vst [vmem:[#allocation7 + $0x28] sm:$0xff] %v241_v50  ;;  %v494_v55 = vpop.eup %493  ;;  %v245_v40 = vsel %vm244_vm12, %v664_v49, %v243_v51  ;;  %v151_v57 = vmul.f32 %v119_v44, %v119_v44  ;;  %v120_v58 = vsub.f32 %v56_v38, %v88_v48  ;;  %vm272_vm4 = vcmp.eq.f32.partialorder %v685_v4, inf }
  0x3c   :  { %v496_v0 = vpop.eup %495  ;;  %v248_v1 = vsel %vm246_vm13, %v247_v24, %v245_v40  ;;  %v250_v2 = vmul.f32 %v494_v55, %v673_v61  ;;  %v121_v3 = vsub.f32 %v57_v52, %v89_v53  ;;  %vm274_vm5 = vcmp.eq.f32.partialorder %v685_v4, 0.0  ;;  %v93_v24 = vld [vmem:[#allocation5 + $0xa8] sm:$0xff] }
  0x3d   :  { %v498_v5 = vpop.eup %497  ;;  %430 = vst [vmem:[#allocation7 + $0x30] sm:$0xff] %v248_v1  ;;  %v257_v6 = vmul.f32 %v496_v0, %v675_v62  ;;  %v275_v7 = vand.u32 2147483648, %v685_v4  ;;  %507 = vrsqrt.f32 %v753_v56  ;;  %v767_v9 = vadd.f32 1e-09, %v151_v57  ;;  %v63_v0 = vld [vmem:[#allocation2 + $0xb8] sm:$0xff] }
  0x3e   :  { %v252_v49 = vsel %vm251_vm14, %v673_v61, %v250_v2  ;;  %v264_v8 = vmul.f32 %v498_v5, %v677_v63  ;;  %v122_v10 = vsub.f32 %v58_v59, %v90_v60  ;;  %v500_v11 = vpop.eup %499  ;;  %v152_v14 = vmul.f32 %v120_v58, %v120_v58  ;;  %v95_v1 = vld [vmem:[#allocation5 + $0xb8] sm:$0xff]  ;;  %v96_v2 = vld [vmem:[#allocation5 + $0xc0] sm:$0xff] }
  0x3f   :  { %v255_v12 = vsel %vm253_vm15, %v254_v35, %v252_v49  ;;  %v259_v13 = vsel %vm258_vm0, %v675_v62, %v257_v6  ;;  %v153_v15 = vmul.f32 %v121_v3, %v121_v3  ;;  %v271_v61 = vmul.f32 %v500_v11, %v685_v4  ;;  %v65_v3 = vld [vmem:[#allocation2 + $0xc8] sm:$0xff] }
  0x40   :  { %431 = vst [vmem:[#allocation7 + $0x38] sm:$0xff] %v255_v12  ;;  %v262_v19 = vsel %vm260_vm1, %v261_v39, %v259_v13  ;;  %v266_v20 = vsel %vm265_vm2, %v677_v63, %v264_v8  ;;  %509 = vrsqrt.f32 %v767_v9  ;;  %vm279_vm6 = vcmp.eq.f32.partialorder %v714_v30, inf  ;;  %v502_v32 = vpop.eup %501  ;;  %v94_v39 = vld [vmem:[#allocation5 + $0xb0] sm:$0xff]  ;;  %v97_v49 = vld [vmem:[#allocation5 + $0xc8] sm:$0xff] }
  0x41   :  { %432 = vst [vmem:[#allocation7 + $0x40] sm:$0xff] %v262_v19  ;;  %v269_v23 = vsel %vm267_vm3, %v268_v54, %v266_v20  ;;  %v282_v62 = vand.u32 2147483648, %v714_v30  ;;  %v273_v27 = vsel %vm272_vm4, %v685_v4, %v271_v61  ;;  %v788_v28 = vadd.f32 1e-09, %v152_v14  ;;  %v66_v8 = vld [vmem:[#allocation2 + $0xd0] sm:$0xff] }
  0x42   :  { %433 = vst [vmem:[#allocation7 + $0x48] sm:$0xff] %v269_v23  ;;  %v790_v29 = vadd.f32 1e-09, %v153_v15  ;;  %v154_v25 = vmul.f32 %v122_v10, %v122_v10  ;;  %v276_v33 = vsel %vm274_vm5, %v275_v7, %v273_v27  ;;  %v123_v63 = vsub.f32 %v59_v16, %v91_v17  ;;  %v504_v36 = vpop.eup %503  ;;  %v98_v10 = vld [vmem:[#allocation5 + $0xd0] sm:$0xff]  ;;  %v99_v23 = vld [vmem:[#allocation5 + $0xd8] sm:$0xff] }
  0x43   :  { %v124_v34 = vsub.f32 %v60_v18, %v92_v21  ;;  %v125_v35 = vsub.f32 %v61_v22, %v93_v24  ;;  %434 = vst [vmem:[#allocation7 + $0x50] sm:$0xff] %v276_v33  ;;  %v278_v26 = vmul.f32 %v502_v32, %v714_v30  ;;  %vm281_vm7 = vcmp.eq.f32.partialorder %v714_v30, 0.0  ;;  %v67_v24 = vld [vmem:[#allocation2 + $0xd8] sm:$0xff] }
  0x44   :  { %vm286_vm8 = vcmp.eq.f32.partialorder %v716_v31, inf  ;;  %511 = vrsqrt.f32 %v788_v28  ;;  %vm288_vm9 = vcmp.eq.f32.partialorder %v716_v31, 0.0  ;;  %v289_v41 = vand.u32 2147483648, %v716_v31 }
  0x45   :  { %vm293_vm10 = vcmp.eq.f32.partialorder %v727_v37, inf  ;;  %513 = vrsqrt.f32 %v790_v29  ;;  %v280_v4 = vsel %vm279_vm6, %v714_v30, %v278_v26  ;;  %v285_v42 = vmul.f32 %v504_v36, %v716_v31  ;;  %v62_v30 = vld [vmem:[#allocation2 + $0xb0] sm:$0xff] }
  0x46   :  { %v296_v43 = vand.u32 2147483648, %v727_v37  ;;  %v807_v44 = vadd.f32 1e-09, %v154_v25  ;;  %v283_v46 = vsel %vm281_vm7, %v282_v62, %v280_v4  ;;  %v155_v47 = vmul.f32 %v123_v63, %v123_v63 }
  0x47   :  { %v506_v45 = vpop.eup %505  ;;  %v156_v38 = vmul.f32 %v124_v34, %v124_v34  ;;  %v157_v48 = vmul.f32 %v125_v35, %v125_v35  ;;  %435 = vst [vmem:[#allocation7 + $0x58] sm:$0xff] %v283_v46  ;;  %v287_v50 = vsel %vm286_vm8, %v716_v31, %v285_v42  ;;  %vm295_vm11 = vcmp.eq.f32.partialorder %v727_v37, 0.0 }
  0x48   :  { %v292_v51 = vmul.f32 %v506_v45, %v727_v37  ;;  %515 = vrsqrt.f32 %v807_v44  ;;  %v290_v52 = vsel %vm288_vm9, %v289_v41, %v287_v50  ;;  %vm300_vm12 = vcmp.eq.f32.partialorder %v753_v56, inf }
  0x49   :  { %vm302_vm13 = vcmp.eq.f32.partialorder %v753_v56, 0.0  ;;  %v819_v53 = vadd.f32 1e-09, %v155_v47  ;;  %436 = vst [vmem:[#allocation7 + $0x60] sm:$0xff] %v290_v52  ;;  %v303_v40 = vand.u32 2147483648, %v753_v56  ;;  %v126_v60 = vsub.f32 %v62_v30, %v94_v39  ;;  %v68_v52 = vld [vmem:[#allocation2 + $0xe0] sm:$0xff] }
  0x4a   :  { %v508_v54 = vpop.eup %507  ;;  %v294_v55 = vsel %vm293_vm10, %v727_v37, %v292_v51  ;;  %v825_v57 = vadd.f32 1e-09, %v156_v38  ;;  %v827_v58 = vadd.f32 1e-09, %v157_v48  ;;  %vm307_vm14 = vcmp.eq.f32.partialorder %v767_v9, inf  ;;  %v64_v37 = vld [vmem:[#allocation2 + $0xc0] sm:$0xff] }
  0x4b   :  { %v297_v31 = vsel %vm295_vm11, %v296_v43, %v294_v55  ;;  %v299_v59 = vmul.f32 %v508_v54, %v753_v56  ;;  %517 = vrsqrt.f32 %v819_v53  ;;  %vm309_vm15 = vcmp.eq.f32.partialorder %v767_v9, 0.0  ;;  %v100_v54 = vld [vmem:[#allocation5 + $0xe0] sm:$0xff]  ;;  %v69_v55 = vld [vmem:[#allocation2 + $0xe8] sm:$0xff] }
  0x4c   :  { %437 = vst [vmem:[#allocation7 + $0x68] sm:$0xff] %v297_v31  ;;  %519 = vrsqrt.f32 %v825_v57  ;;  %v310_v7 = vand.u32 2147483648, %v767_v9  ;;  %vm314_vm0 = vcmp.eq.f32.partialorder %v788_v28, inf  ;;  %vm316_vm1 = vcmp.eq.f32.partialorder %v788_v28, 0.0 }
  0x4d   :  { %v510_v5 = vpop.eup %509  ;;  %v301_v6 = vsel %vm300_vm12, %v753_v56, %v299_v59  ;;  %521 = vrsqrt.f32 %v827_v58  ;;  %v317_v13 = vand.u32 2147483648, %v788_v28  ;;  %vm321_vm2 = vcmp.eq.f32.partialorder %v790_v29, inf }
  0x4e   :  { %v304_v11 = vsel %vm302_vm13, %v303_v40, %v301_v6  ;;  %v306_v12 = vmul.f32 %v510_v5, %v767_v9  ;;  %v158_v14 = vmul.f32 %v126_v60, %v126_v60  ;;  %v127_v15 = vsub.f32 %v63_v0, %v95_v1  ;;  %v70_v60 = vld [vmem:[#allocation2 + $0xf0] sm:$0xff] }
  0x4f   :  { %438 = vst [vmem:[#allocation7 + $0x70] sm:$0xff] %v304_v11  ;;  %v128_v16 = vsub.f32 %v64_v37, %v96_v2  ;;  %vm323_vm3 = vcmp.eq.f32.partialorder %v790_v29, 0.0  ;;  %v129_v56 = vsub.f32 %v65_v3, %v97_v49  ;;  %v130_v18 = vsub.f32 %v66_v8, %v98_v10  ;;  %v102_v0 = vld [vmem:[#allocation5 + $0xf0] sm:$0xff]  ;;  %v71_v11 = vld [vmem:[#allocation2 + $0xf8] sm:$0xff] }
  0x50   :  { %v308_v17 = vsel %vm307_vm14, %v767_v9, %v306_v12  ;;  %v852_v61 = vadd.f32 1e-09, %v158_v14  ;;  %v159_v21 = vmul.f32 %v127_v15, %v127_v15  ;;  %v324_v25 = vand.u32 2147483648, %v790_v29  ;;  %v103_v12 = vld [vmem:[#allocation5 + $0xf8] sm:$0xff] }
  0x51   :  { %v512_v19 = vpop.eup %511  ;;  %v311_v20 = vsel %vm309_vm15, %v310_v7, %v308_v17  ;;  %v160_v22 = vmul.f32 %v128_v16, %v128_v16  ;;  %v161_v32 = vmul.f32 %v129_v56, %v129_v56  ;;  %v162_v33 = vmul.f32 %v130_v18, %v130_v18 }
  0x52   :  { %v514_v62 = vpop.eup %513  ;;  %439 = vst [vmem:[#allocation7 + $0x78] sm:$0xff] %v311_v20  ;;  %v313_v27 = vmul.f32 %v512_v19, %v788_v28  ;;  %vm328_vm4 = vcmp.eq.f32.partialorder %v807_v44, inf  ;;  %vm330_vm5 = vcmp.eq.f32.partialorder %v807_v44, 0.0  ;;  %523 = vrsqrt.f32 %v852_v61 }
  0x53   :  { %v320_v63 = vmul.f32 %v514_v62, %v790_v29  ;;  %v863_v34 = vadd.f32 1e-09, %v159_v21  ;;  %v865_v35 = vadd.f32 1e-09, %v160_v22  ;;  %v131_v26 = vsub.f32 %v67_v24, %v99_v23 }
  0x54   :  { %v315_v9 = vsel %vm314_vm0, %v788_v28, %v313_v27  ;;  %v331_v42 = vand.u32 2147483648, %v807_v44  ;;  %v873_v43 = vadd.f32 1e-09, %v161_v32  ;;  %v879_v47 = vadd.f32 1e-09, %v162_v33 }
  0x55   :  { %v516_v36 = vpop.eup %515  ;;  %v318_v41 = vsel %vm316_vm1, %v317_v13, %v315_v9  ;;  %v322_v4 = vsel %vm321_vm2, %v790_v29, %v320_v63  ;;  %525 = vrsqrt.f32 %v863_v34  ;;  %vm335_vm6 = vcmp.eq.f32.partialorder %v819_v53, inf }
  0x56   :  { %440 = vst [vmem:[#allocation7 + $0x80] sm:$0xff] %v318_v41  ;;  %v325_v45 = vsel %vm323_vm3, %v324_v25, %v322_v4  ;;  %v327_v46 = vmul.f32 %v516_v36, %v807_v44  ;;  %vm337_vm7 = vcmp.eq.f32.partialorder %v819_v53, 0.0  ;;  %v338_v28 = vand.u32 2147483648, %v819_v53 }
  0x57   :  { %441 = vst [vmem:[#allocation7 + $0x88] sm:$0xff] %v325_v45  ;;  %527 = vrsqrt.f32 %v865_v35  ;;  %vm342_vm8 = vcmp.eq.f32.partialorder %v825_v57, inf  ;;  %v163_v48 = vmul.f32 %v131_v26, %v131_v26  ;;  %vm344_vm9 = vcmp.eq.f32.partialorder %v825_v57, 0.0 }
  0x58   :  { %v518_v38 = vpop.eup %517  ;;  %v329_v29 = vsel %vm328_vm4, %v807_v44, %v327_v46  ;;  %529 = vrsqrt.f32 %v873_v43  ;;  %v345_v39 = vand.u32 2147483648, %v825_v57  ;;  %vm349_vm10 = vcmp.eq.f32.partialorder %v827_v58, inf  ;;  %v101_v44 = vld [vmem:[#allocation5 + $0xe8] sm:$0xff] }
  0x59   :  { %v520_v50 = vpop.eup %519  ;;  %v332_v51 = vsel %vm330_vm5, %v331_v42, %v329_v29  ;;  %v334_v30 = vmul.f32 %v518_v38, %v819_v53  ;;  %v352_v59 = vand.u32 2147483648, %v827_v58  ;;  %531 = vrsqrt.f32 %v879_v47 }
  0x5a   :  { %v522_v40 = vpop.eup %521  ;;  %442 = vst [vmem:[#allocation7 + $0x90] sm:$0xff] %v332_v51  ;;  %v341_v31 = vmul.f32 %v520_v50, %v825_v57  ;;  %vm351_vm11 = vcmp.eq.f32.partialorder %v827_v58, 0.0  ;;  %v909_v5 = vadd.f32 1e-09, %v163_v48  ;;  %v132_v6 = vsub.f32 %v68_v52, %v100_v54 }
  0x5b   :  { %v336_v1 = vsel %vm335_vm6, %v819_v53, %v334_v30  ;;  %v348_v37 = vmul.f32 %v522_v40, %v827_v58  ;;  %v133_v8 = vsub.f32 %v69_v55, %v101_v44  ;;  %v134_v10 = vsub.f32 %v70_v60, %v102_v0 }
  0x5c   :  { %v339_v2 = vsel %vm337_vm7, %v338_v28, %v336_v1  ;;  %v343_v3 = vsel %vm342_vm8, %v825_v57, %v341_v31  ;;  %533 = vrsqrt.f32 %v909_v5  ;;  %v164_v13 = vmul.f32 %v132_v6, %v132_v6 }
  0x5d   :  { %443 = vst [vmem:[#allocation7 + $0x98] sm:$0xff] %v339_v2  ;;  %v346_v7 = vsel %vm344_vm9, %v345_v39, %v343_v3  ;;  %v350_v49 = vsel %vm349_vm10, %v827_v58, %v348_v37  ;;  %v165_v14 = vmul.f32 %v133_v8, %v133_v8  ;;  %v166_v15 = vmul.f32 %v134_v10, %v134_v10 }
  0x5e   :  { %444 = vst [vmem:[#allocation7 + $0xa0] sm:$0xff] %v346_v7  ;;  %v353_v53 = vsel %vm351_vm11, %v352_v59, %v350_v49  ;;  %vm356_vm12 = vcmp.eq.f32.partialorder %v852_v61, inf  ;;  %vm358_vm13 = vcmp.eq.f32.partialorder %v852_v61, 0.0  ;;  %v359_v57 = vand.u32 2147483648, %v852_v61 }
  0x5f   :  { %445 = vst [vmem:[#allocation7 + $0xa8] sm:$0xff] %v353_v53  ;;  %v524_v16 = vpop.eup %523  ;;  %v135_v58 = vsub.f32 %v71_v11, %v103_v12  ;;  %vm363_vm14 = vcmp.eq.f32.partialorder %v863_v34, inf  ;;  %v920_v56 = vadd.f32 1e-09, %v164_v13  ;;  %v922_v18 = vadd.f32 1e-09, %v165_v14 }
  0x60   :  { %v355_v17 = vmul.f32 %v524_v16, %v852_v61  ;;  %vm365_vm15 = vcmp.eq.f32.partialorder %v863_v34, 0.0  ;;  %v366_v19 = vand.u32 2147483648, %v863_v34  ;;  %vm370_vm0 = vcmp.eq.f32.partialorder %v865_v35, inf }
  0x61   :  { %v927_v20 = vadd.f32 1e-09, %v166_v15  ;;  %vm372_vm1 = vcmp.eq.f32.partialorder %v865_v35, 0.0  ;;  %v373_v24 = vand.u32 2147483648, %v865_v35  ;;  %535 = vrsqrt.f32 %v920_v56 }
  0x62   :  { %v526_v21 = vpop.eup %525  ;;  %v357_v22 = vsel %vm356_vm12, %v852_v61, %v355_v17  ;;  %537 = vrsqrt.f32 %v922_v18  ;;  %v167_v25 = vmul.f32 %v135_v58, %v135_v58  ;;  %vm377_vm2 = vcmp.eq.f32.partialorder %v873_v43, inf }
  0x63   :  { %v360_v62 = vsel %vm358_vm13, %v359_v57, %v357_v22  ;;  %v362_v27 = vmul.f32 %v526_v21, %v863_v34  ;;  %vm379_vm3 = vcmp.eq.f32.partialorder %v873_v43, 0.0  ;;  %v380_v63 = vand.u32 2147483648, %v873_v43 }
  0x64   :  { %v528_v23 = vpop.eup %527  ;;  %446 = vst [vmem:[#allocation7 + $0xb0] sm:$0xff] %v360_v62  ;;  %vm384_vm4 = vcmp.eq.f32.partialorder %v879_v47, inf  ;;  %539 = vrsqrt.f32 %v927_v20  ;;  %vm386_vm5 = vcmp.eq.f32.partialorder %v879_v47, 0.0  ;;  %v387_v4 = vand.u32 2147483648, %v879_v47 }
  0x65   :  { %v530_v32 = vpop.eup %529  ;;  %v369_v33 = vmul.f32 %v528_v23, %v865_v35  ;;  %v364_v61 = vsel %vm363_vm14, %v863_v34, %v362_v27  ;;  %v199_v28 = vadd.f32 1e-09, %v167_v25  ;;  %vm391_vm6 = vcmp.eq.f32.partialorder %v909_v5, inf }
  0x66   :  { %v376_v9 = vmul.f32 %v530_v32, %v873_v43  ;;  %v532_v26 = vpop.eup %531  ;;  %v367_v36 = vsel %vm365_vm15, %v366_v19, %v364_v61  ;;  %vm393_vm7 = vcmp.eq.f32.partialorder %v909_v5, 0.0  ;;  %vm398_vm8 = vcmp.eq.f32.partialorder %v920_v56, inf }
  0x67   :  { %v371_v41 = vsel %vm370_vm0, %v865_v35, %v369_v33  ;;  %447 = vst [vmem:[#allocation7 + $0xb8] sm:$0xff] %v367_v36  ;;  %v383_v46 = vmul.f32 %v532_v26, %v879_v47  ;;  %541 = vrsqrt.f32 %v199_v28  ;;  %v394_v35 = vand.u32 2147483648, %v909_v5 }
  0x68   :  { %v374_v42 = vsel %vm372_vm1, %v373_v24, %v371_v41  ;;  %v378_v45 = vsel %vm377_vm2, %v873_v43, %v376_v9  ;;  %vm400_vm9 = vcmp.eq.f32.partialorder %v920_v56, 0.0  ;;  %vm405_vm10 = vcmp.eq.f32.partialorder %v922_v18, inf }
  0x69   :  { %448 = vst [vmem:[#allocation7 + $0xc0] sm:$0xff] %v374_v42  ;;  %v381_v34 = vsel %vm379_vm3, %v380_v63, %v378_v45  ;;  %v385_v38 = vsel %vm384_vm4, %v879_v47, %v383_v46  ;;  %v534_v29 = vpop.eup %533  ;;  %v401_v47 = vand.u32 2147483648, %v920_v56  ;;  %v408_v54 = vand.u32 2147483648, %v922_v18 }
  0x6a   :  { %449 = vst [vmem:[#allocation7 + $0xc8] sm:$0xff] %v381_v34  ;;  %v388_v48 = vsel %vm386_vm5, %v387_v4, %v385_v38  ;;  %v390_v50 = vmul.f32 %v534_v29, %v909_v5  ;;  %vm407_vm11 = vcmp.eq.f32.partialorder %v922_v18, 0.0  ;;  %vm412_vm12 = vcmp.eq.f32.partialorder %v927_v20, inf }
  0x6b   :  { %450 = vst [vmem:[#allocation7 + $0xd0] sm:$0xff] %v388_v48  ;;  %v415_v59 = vand.u32 2147483648, %v927_v20  ;;  %vm414_vm13 = vcmp.eq.f32.partialorder %v927_v20, 0.0  ;;  %vm419_vm14 = vcmp.eq.f32.partialorder %v199_v28, inf  ;;  %vm421_vm15 = vcmp.eq.f32.partialorder %v199_v28, 0.0 }
  0x6c   :  { %v392_v51 = vsel %vm391_vm6, %v909_v5, %v390_v50  ;;  %v422_v5 = vand.u32 2147483648, %v199_v28 }
  0x6d   :  { %v395_v30 = vsel %vm393_vm7, %v394_v35, %v392_v51 }
  0x6e   :  { %v536_v43 = vpop.eup %535  ;;  %451 = vst [vmem:[#allocation7 + $0xd8] sm:$0xff] %v395_v30 }
  0x6f   :  { %v538_v39 = vpop.eup %537  ;;  %v397_v52 = vmul.f32 %v536_v43, %v920_v56 }
  0x70   :  { %v404_v55 = vmul.f32 %v538_v39, %v922_v18 }
  0x71   :  { %v540_v40 = vpop.eup %539  ;;  %v399_v31 = vsel %vm398_vm8, %v920_v56, %v397_v52 }
  0x72   :  { %v402_v44 = vsel %vm400_vm9, %v401_v47, %v399_v31  ;;  %v406_v60 = vsel %vm405_vm10, %v922_v18, %v404_v55  ;;  %v411_v0 = vmul.f32 %v540_v40, %v927_v20 }
  0x73   :  { %452 = vst [vmem:[#allocation7 + $0xe0] sm:$0xff] %v402_v44  ;;  %v409_v1 = vsel %vm407_vm11, %v408_v54, %v406_v60 }
  0x74   :  { %453 = vst [vmem:[#allocation7 + $0xe8] sm:$0xff] %v409_v1  ;;  %v413_v37 = vsel %vm412_vm12, %v927_v20, %v411_v0  ;;  %v542_v2 = vpop.eup %541 }
  0x75   :  { %v416_v3 = vsel %vm414_vm13, %v415_v59, %v413_v37  ;;  %v418_v6 = vmul.f32 %v542_v2, %v199_v28 }
  0x76   :  { %454 = vst [vmem:[#allocation7 + $0xf0] sm:$0xff] %v416_v3 }
  0x77   :  { %v420_v7 = vsel %vm419_vm14, %v199_v28, %v418_v6 }
  0x78   :  { %v423_v49 = vsel %vm421_vm15, %v422_v5, %v420_v7 }
  0x79   :  { %455 = vst [vmem:[#allocation7 + $0xf8] sm:$0xff] %v423_v49 }
  0x7a   :  { %594 = shalt.err (!%p591_p0)
}
  0x7b   :  { %467 = dma.vmem_to_hbm [thread:$0]  %s462_s1, 4096, %s989_s2, [#allocation4], %s610_s12, %s610_s12, %s611_s13  }
  0x7c   :  { %607 = dma.done.wait [#allocation4], 4096  }
  0x7d   :  { %608 = vsyncadd [#allocation4], 4294963200 }
  0x7e   :  { %471 = vsyncpa [#allocation3], 1 }
  0x7f   :  { %472 = vsyncpa [#allocation6], 1 }
  0x80   :  { %473 = vsyncpa [#allocation4], 1 }

</bundles_post_ra>
